<compile_context>
chip_gen: v5e
topology: v5e:2x2
jax: 0.10.0
libtpu: 0.0.40
codegen_flags: <defaults>
</compile_context>

<pallas_src>
import functools

import jax
import jax.numpy as jnp
from jax.experimental import pallas as pl
from jax.experimental.pallas import tpu as pltpu

_EPS = 1e-10


def _gumbel_softmax_kernel(*refs, inv_temp, hard, test):
    """One grid step processes a [TB, C] row-block.

    refs (test=False): logits_ref f32[TB, C], u_ref f32[TB, C], out_ref [TB, C]
    refs (test=True):  logits_ref f32[TB, C],                   out_ref [TB, C]
    """
    if test:
        logits_ref, out_ref = refs
        z = logits_ref[...].astype(jnp.float32)
    else:
        logits_ref, u_ref, out_ref = refs
        u = u_ref[...].astype(jnp.float32)
        # Gumbel noise: g = -log(eps - log(u + eps)), u ~ U[0, 1)
        g = -jnp.log(_EPS - jnp.log(u + _EPS))
        z = logits_ref[...].astype(jnp.float32) + g

    if hard:
        # One-hot of argmax over dim=1.  argmax is invariant under softmax and
        # positive temperature scaling, so skip exp/sum/divide entirely; the
        # forward value equals PyTorch's `(y_hard - y).detach() + y`.
        n_class = z.shape[1]
        col = jax.lax.broadcasted_iota(jnp.int32, z.shape, 1)
        zmax = jnp.max(z, axis=1, keepdims=True)
        is_max = z >= zmax
        # first index achieving the max (matches torch .max(1) tie-breaking)
        first_idx = jnp.min(
            jnp.where(is_max, col, jnp.int32(n_class)), axis=1, keepdims=True
        )
        y = (col == first_idx).astype(jnp.float32)
    else:
        z = z * inv_temp  # temp is a Python float -> reciprocal folded at trace time
        m = jnp.max(z, axis=1, keepdims=True)
        e = jnp.exp(z - m)
        s = jnp.sum(e, axis=1, keepdims=True)
        # NOTE: on a real TPU pl.reciprocal(s, approx=True) would move this to
        # the (idle) EUP slot; plain divide is used for CPU/interpret portability.
        y = e / s

    out_ref[...] = y.astype(out_ref.dtype)


def _pick_batch_tile(B, C, num_arrays):
    """Choose a batch-row tile so double-buffered pipeline buffers stay small.

    Target ~12 MiB of VMEM buffers total (safe under the 16 MiB v5e scoped
    default and far under v7x's 64 MiB physical VMEM), capped at 1024 rows to
    amortize the ~0.35 us per-grid-step overhead.
    """
    budget_bytes = 12 * 1024 * 1024
    bytes_per_row = max(1, num_arrays * 2 * C * 4)  # x2 double-buffering, f32
    tb = min(B, 1024, max(8, budget_bytes // bytes_per_row))
    if tb >= B:
        return B
    tb = max(8, (tb // 8) * 8)          # keep the sublane (8) alignment
    while tb > 8 and B % tb != 0:       # prefer an exact divisor of B
        tb -= 8
    if B % tb != 0:
        return B                        # fall back to a single full block
    return tb


def gumble_softmax_forward(logits, key=None, *, temp=1.0, force_hard=False,
                           test=False, block_rows=None):
    """Pallas equivalent of GumbleSoftmax.forward(logits, force_hard, test)."""
    B, C = logits.shape
    num_arrays = 2 if test else 3  # logits (+ noise) + output
    if block_rows is not None:
        TB = int(block_rows)
        if B % TB != 0 or not (TB == B or TB % 8 == 0):
            raise ValueError("block_rows must divide B and be a multiple of 8")
    else:
        TB = _pick_batch_tile(B, C, num_arrays)
    grid = (B // TB,)

    kernel = functools.partial(
        _gumbel_softmax_kernel,
        inv_temp=1.0 / float(temp),
        hard=bool(force_hard),
        test=bool(test),
    )

    def row_spec():
        # C stays whole in the lane axis so each row's softmax lives in one block.
        # For tiny n_class (< 128) a lane-dense layout (pad C to 128 or present
        # the transposed [C, B] slab) would further widen stores; not done here
        # to keep the module's [batch, n_class] interface byte-identical.
        return pl.BlockSpec((TB, C), lambda i: (i, 0))

    if test:
        in_specs = [row_spec()]
        args = (logits,)
    else:
        if key is None:
            raise ValueError("a jax.random key is required when test=False")
        # Uniform noise generated once per call; BlockSpec slices it per tile,
        # so every batch tile gets independent Gumbel noise.
        u = jax.random.uniform(key, (B, C), dtype=jnp.float32)
        in_specs = [row_spec(), row_spec()]
        args = (logits, u)

    # TODO(synk): no straight-through estimator (custom_vjp) is attached, so
    # autodiff through the hard path does not reproduce PyTorch's
    # `(y_hard - y).detach() + y` gradient; forward values match exactly.
    return pl.pallas_call(
        kernel,
        out_shape=jax.ShapeDtypeStruct((B, C), logits.dtype),
        grid=grid,
        in_specs=in_specs,
        out_specs=row_spec(),
        compiler_params=pltpu.CompilerParams(
            dimension_semantics=("parallel",),   # batch tiles are independent
            vmem_limit_bytes=32 * 1024 * 1024,   # safe on v5e/v6e/v7x
        ),
    )(*args)


if __name__ == "__main__":
    key = jax.random.PRNGKey(0)
    k_logits, k_noise = jax.random.split(key)
    B, C = 64, 16
    logits = jax.random.normal(k_logits, (B, C), dtype=jnp.float32)

    # soft sample (training path: noise added, softmax output)
    y_soft = gumble_softmax_forward(logits, k_noise, temp=1.0,
                                    force_hard=False, test=False)
    # hard sample (force_hard=True): one-hot rows
    y_hard = gumble_softmax_forward(logits, k_noise, temp=1.0,
                                    force_hard=True, test=False)
    # test=True path (no noise) == plain softmax of logits / temp
    y_test = gumble_softmax_forward(logits, temp=1.0,
                                    force_hard=False, test=True)
    # multi-tile grid exercise (grid=(8,)) must match the single-block result
    y_soft_tiled = gumble_softmax_forward(logits, k_noise, temp=1.0,
                                          force_hard=False, test=False,
                                          block_rows=8)
    jax.block_until_ready((y_soft, y_hard, y_test, y_soft_tiled))

    # references (recompute the same noise deterministically from the same key)
    u_ref = jax.random.uniform(k_noise, (B, C), dtype=jnp.float32)
    g_ref = -jnp.log(_EPS - jnp.log(u_ref + _EPS))
    z_ref = logits + g_ref
    soft_ref = jax.nn.softmax(z_ref, axis=1)

    assert y_soft.shape == (B, C) and y_hard.shape == (B, C)
    assert jnp.allclose(jnp.sum(y_soft, axis=1), 1.0, atol=1e-5)
    assert jnp.allclose(y_soft, soft_ref, atol=1e-5)
    assert jnp.allclose(y_soft_tiled, y_soft, atol=1e-6)
    assert jnp.all((y_hard == 0.0) | (y_hard == 1.0))
    assert jnp.allclose(jnp.sum(y_hard, axis=1), 1.0, atol=1e-6)
    assert jnp.array_equal(jnp.argmax(y_hard, axis=1), jnp.argmax(z_ref, axis=1))
    assert jnp.allclose(y_test, jax.nn.softmax(logits, axis=1), atol=1e-5)

    print("KERNEL_OK")
</pallas_src>

<mosaic_0001>
module attributes {stable_mosaic.version = 11 : i64} {
  func.func @_gumbel_softmax_kernel(%arg0: i32, %arg1: memref<64x16xf32, #tpu.memory_space<vmem>>, %arg2: memref<64x16xf32, #tpu.memory_space<vmem>>, %arg3: memref<64x16xf32, #tpu.memory_space<vmem>>) attributes {dimension_semantics = [#tpu.dimension_semantics<parallel>], iteration_bounds = array<i64: 1>, scalar_prefetch = 0 : i64, scratch_operands = 0 : i64, tpu.core_type = #tpu.core_type<tc>, window_params = [{transform_indices = @transform_0, window_bounds = array<i64: 64, 16>}, {transform_indices = @transform_1, window_bounds = array<i64: 64, 16>}, {transform_indices = @transform_2, window_bounds = array<i64: 64, 16>}]} {
    %c0 = arith.constant 0 : index
    %c0_0 = arith.constant 0 : index
    %0 = vector.load %arg2[%c0, %c0_0] : memref<64x16xf32, #tpu.memory_space<vmem>>, vector<64x16xf32>
    %cst = arith.constant 1.000000e-10 : f32
    %1 = vector.broadcast %cst : f32 to vector<64x16xf32>
    %2 = arith.addf %0, %1 : vector<64x16xf32>
    %3 = math.log %2 : vector<64x16xf32>
    %cst_1 = arith.constant 1.000000e-10 : f32
    %4 = vector.broadcast %cst_1 : f32 to vector<64x16xf32>
    %5 = arith.subf %4, %3 : vector<64x16xf32>
    %6 = math.log %5 : vector<64x16xf32>
    %cst_2 = arith.constant 0.000000e+00 : f32
    %7 = vector.broadcast %cst_2 : f32 to vector<64x16xf32>
    %8 = arith.subf %7, %6 : vector<64x16xf32>
    %c0_3 = arith.constant 0 : index
    %c0_4 = arith.constant 0 : index
    %9 = vector.load %arg1[%c0_3, %c0_4] : memref<64x16xf32, #tpu.memory_space<vmem>>, vector<64x16xf32>
    %10 = arith.addf %9, %8 : vector<64x16xf32>
    %cst_5 = arith.constant 1.000000e+00 : f32
    %11 = vector.broadcast %cst_5 : f32 to vector<64x16xf32>
    %12 = arith.mulf %10, %11 : vector<64x16xf32>
    %cst_6 = arith.constant dense<0xFF800000> : vector<64xf32>
    %13 = vector.multi_reduction <maximumf>, %12, %cst_6 [1] : vector<64x16xf32> to vector<64xf32>
    %14 = vector.shape_cast %13 : vector<64xf32> to vector<64x1xf32>
    %15 = vector.broadcast %14 : vector<64x1xf32> to vector<64x16xf32>
    %16 = arith.subf %12, %15 : vector<64x16xf32>
    %17 = math.exp %16 : vector<64x16xf32>
    %cst_7 = arith.constant dense<0.000000e+00> : vector<64xf32>
    %18 = vector.multi_reduction <add>, %17, %cst_7 [1] : vector<64x16xf32> to vector<64xf32>
    %19 = vector.shape_cast %18 : vector<64xf32> to vector<64x1xf32>
    %20 = vector.broadcast %19 : vector<64x1xf32> to vector<64x16xf32>
    %21 = arith.divf %17, %20 : vector<64x16xf32>
    %c0_8 = arith.constant 0 : index
    %c0_9 = arith.constant 0 : index
    %22 = vector.load %arg3[%c0_8, %c0_9] : memref<64x16xf32, #tpu.memory_space<vmem>>, vector<64x16xf32>
    tpu.vector_store %arg3[%c0_8, %c0_9], %21 {strides = array<i32>} : memref<64x16xf32, #tpu.memory_space<vmem>>, vector<64x16xf32>,
    return
  }
  func.func @transform_0(%arg0: i32) -> (i32, i32) {
    %c0_i32 = arith.constant 0 : i32
    %c0_i32_0 = arith.constant 0 : i32
    return %arg0, %c0_i32 : i32, i32
  }
  func.func @transform_1(%arg0: i32) -> (i32, i32) {
    %c0_i32 = arith.constant 0 : i32
    %c0_i32_0 = arith.constant 0 : i32
    return %arg0, %c0_i32 : i32, i32
  }
  func.func @transform_2(%arg0: i32) -> (i32, i32) {
    %c0_i32 = arith.constant 0 : i32
    %c0_i32_0 = arith.constant 0 : i32
    return %arg0, %c0_i32 : i32, i32
  }
}

</mosaic_0001>

<bundles_post_ra>
// kernel: tpu_custom_call.1
= control target key start
LH: loop header
LB: loop body
LE: loop exit
PB: predicated region body
PF: predicated region fallthrough
CT: control target
= control target key end

     0   :  { %vm91_vm0 = vcmask 130048   ;;  %s556_s1 = inlined_call_operand.vmem [shape: f32[64,16], index: 1, kind: input, shape index: {}]   ;;  %s557_s0 = inlined_call_operand.vmem [shape: f32[64,16], index: 0, kind: input, shape index: {}]   ;;  %s558_s2 = inlined_call_operand.vmem [shape: f32[64,16], index: 2, kind: output, shape index: {}]  }
   0x1   :  { %v15_v0 = vld [vmem:[%s556_s1 + $0x20] sm:$0xff]  ;;  %v13_v1 = vld [vmem:[%s556_s1 + $0x10] sm:$0xff]  ;;  %v16_v6 = vld [vmem:[%s556_s1 + $0x28] sm:$0xff] }
   0x2   :  { %v23_v2 = vadd.f32 1e-10, %v15_v0  ;;  %v21_v3 = vadd.f32 1e-10, %v13_v1  ;;  %v11_v4 = vld [vmem:[%s556_s1] sm:$0xff]  ;;  %v14_v8 = vld [vmem:[%s556_s1 + $0x18] sm:$0xff] }
   0x3   :  { %v19_v5 = vadd.f32 1e-10, %v11_v4  ;;  %v24_v7 = vadd.f32 1e-10, %v16_v6  ;;  %v12_v9 = vld [vmem:[%s556_s1 + $0x8] sm:$0xff]  ;;  %v17_v12 = vld [vmem:[%s556_s1 + $0x30] sm:$0xff] }
   0x4   :  { %296 = vlog2.f32 %v23_v2  ;;  %v22_v10 = vadd.f32 1e-10, %v14_v8  ;;  %v20_v11 = vadd.f32 1e-10, %v12_v9  ;;  %v25_v13 = vadd.f32 1e-10, %v17_v12 }
   0x5   :  { %298 = vlog2.f32 %v21_v3  ;;  %v18_v14 = vld [vmem:[%s556_s1 + $0x38] sm:$0xff]  ;;  %v79_v44 = vld [vmem:[%s557_s0 + $0x20] sm:$0xff]  ;;  %v77_v48 = vld [vmem:[%s557_s0 + $0x10] sm:$0xff] }
   0x6   :  { %300 = vlog2.f32 %v19_v5  ;;  %v26_v15 = vadd.f32 1e-10, %v18_v14  ;;  %v75_v52 = vld [vmem:[%s557_s0] sm:$0xff]  ;;  %v80_v60 = vld [vmem:[%s557_s0 + $0x28] sm:$0xff]  ;;  %v78_v2 = vld [vmem:[%s557_s0 + $0x18] sm:$0xff] }
   0x7   :  { %302 = vlog2.f32 %v24_v7  ;;  %v76_v6 = vld [vmem:[%s557_s0 + $0x8] sm:$0xff] }
   0x8   :  { %304 = vlog2.f32 %v22_v10 }
   0x9   :  { %306 = vlog2.f32 %v20_v11 }
   0xa   :  { %v297_v16 = vpop.eup %296  ;;  %308 = vlog2.f32 %v25_v13 }
   0xb   :  { %v299_v17 = vpop.eup %298  ;;  %v36_v18 = vmul.f32 0.6931472, %v297_v16  ;;  %310 = vlog2.f32 %v26_v15 }
   0xc   :  { %v301_v19 = vpop.eup %300  ;;  %v32_v20 = vmul.f32 0.6931472, %v299_v17 }
   0xd   :  { %v303_v21 = vpop.eup %302  ;;  %v47_v22 = vsub.f32 1e-10, %v36_v18  ;;  %v28_v23 = vmul.f32 0.6931472, %v301_v19  ;;  %v82_v18 = vld [vmem:[%s557_s0 + $0x38] sm:$0xff]  ;;  %v81_v19 = vld [vmem:[%s557_s0 + $0x30] sm:$0xff] }
   0xe   :  { %v305_v24 = vpop.eup %304  ;;  %v45_v25 = vsub.f32 1e-10, %v32_v20  ;;  %v38_v26 = vmul.f32 0.6931472, %v303_v21 }
   0xf   :  { %v307_v27 = vpop.eup %306  ;;  %312 = vlog2.f32 %v47_v22  ;;  %v43_v28 = vsub.f32 1e-10, %v28_v23  ;;  %v34_v29 = vmul.f32 0.6931472, %v305_v24 }
  0x10   :  { %v309_v30 = vpop.eup %308  ;;  %314 = vlog2.f32 %v45_v25  ;;  %v48_v31 = vsub.f32 1e-10, %v38_v26  ;;  %v30_v32 = vmul.f32 0.6931472, %v307_v27 }
  0x11   :  { %v311_v33 = vpop.eup %310  ;;  %316 = vlog2.f32 %v43_v28  ;;  %v46_v34 = vsub.f32 1e-10, %v34_v29  ;;  %v40_v35 = vmul.f32 0.6931472, %v309_v30 }
  0x12   :  { %318 = vlog2.f32 %v48_v31  ;;  %v44_v36 = vsub.f32 1e-10, %v30_v32  ;;  %v42_v37 = vmul.f32 0.6931472, %v311_v33 }
  0x13   :  { %320 = vlog2.f32 %v46_v34  ;;  %v49_v38 = vsub.f32 1e-10, %v40_v35 }
  0x14   :  { %322 = vlog2.f32 %v44_v36  ;;  %v50_v39 = vsub.f32 1e-10, %v42_v37 }
  0x15   :  { %v313_v40 = vpop.eup %312 }
  0x16   :  { %v315_v41 = vpop.eup %314  ;;  %v60_v42 = vmul.f32 0.6931472, %v313_v40  ;;  %324 = vlog2.f32 %v50_v39 }
  0x17   :  { %v317_v43 = vpop.eup %316  ;;  %v56_v45 = vmul.f32 0.6931472, %v315_v41  ;;  %326 = vlog2.f32 %v49_v38 }
  0x18   :  { %v319_v46 = vpop.eup %318  ;;  %v71_v47 = vsub.f32 0.0, %v60_v42  ;;  %v52_v49 = vmul.f32 0.6931472, %v317_v43 }
  0x19   :  { %v321_v50 = vpop.eup %320  ;;  %v69_v51 = vsub.f32 0.0, %v56_v45  ;;  %v62_v53 = vmul.f32 0.6931472, %v319_v46 }
  0x1a   :  { %v323_v54 = vpop.eup %322  ;;  %v408_v55 = vadd.f32 %v79_v44, %v71_v47  ;;  %v67_v56 = vsub.f32 0.0, %v52_v49  ;;  %v58_v57 = vmul.f32 0.6931472, %v321_v50 }
  0x1b   :  { %v85_v58 = vadd.f32 %v77_v48, %v69_v51  ;;  %v72_v59 = vsub.f32 0.0, %v62_v53  ;;  %v54_v61 = vmul.f32 0.6931472, %v323_v54 }
  0x1c   :  { %v325_v62 = vpop.eup %324  ;;  %v104_v63 = vsel %vm91_vm0, %v408_v55, -inf  ;;  %v83_v0 = vadd.f32 %v75_v52, %v67_v56  ;;  %v70_v1 = vsub.f32 0.0, %v58_v57 }
  0x1d   :  { %v327_v3 = vpop.eup %326  ;;  %105 = vmax.xlane.f32.xlu2 %v104_v63  ;;  %v98_v4 = vsel %vm91_vm0, %v85_v58, -inf  ;;  %v68_v5 = vsub.f32 0.0, %v54_v61  ;;  %v88_v8 = vadd.f32 %v80_v60, %v72_v59  ;;  %v66_v10 = vmul.f32 0.6931472, %v325_v62 }
  0x1e   :  { %99 = vmax.xlane.f32.xlu1 %v98_v4  ;;  %v92_v7 = vsel %vm91_vm0, %v83_v0, -inf  ;;  %v86_v9 = vadd.f32 %v78_v2, %v70_v1  ;;  %v64_v12 = vmul.f32 0.6931472, %v327_v3 }
  0x1f   :  { %93 = vmax.xlane.f32.xlu0 %v92_v7  ;;  %v84_v11 = vadd.f32 %v76_v6, %v68_v5  ;;  %v107_v13 = vsel %vm91_vm0, %v88_v8, -inf  ;;  %v74_v15 = vsub.f32 0.0, %v66_v10 }
  0x20   :  { %v101_v14 = vsel %vm91_vm0, %v86_v9, -inf  ;;  %v73_v17 = vsub.f32 0.0, %v64_v12 }
  0x21   :  { %v95_v16 = vsel %vm91_vm0, %v84_v11, -inf  ;;  %v90_v20 = vadd.f32 %v82_v18, %v74_v15 }
  0x22   :  { %v89_v21 = vadd.f32 %v81_v19, %v73_v17 }
  0x23   :  { %v113_v22 = vsel %vm91_vm0, %v90_v20, -inf }
  0x24   :  { %v110_v23 = vsel %vm91_vm0, %v89_v21, -inf }
  0x25   :  { %108 = vmax.xlane.f32.xlu2 %v107_v13 }
  0x26   :  { %102 = vmax.xlane.f32.xlu1 %v101_v14 }
  0x27   :  { %96 = vmax.xlane.f32.xlu0 %v95_v16 }
  0x2e   :  { %114 = vmax.xlane.f32.xlu1 %v113_v22 }
  0x2f   :  { %111 = vmax.xlane.f32.xlu0 %v110_v23 }
  0x90   :  { %v106_v24 = vpop.xlane.xlu2 %105 }
  0x91   :  { %v100_v25 = vpop.xlane.xlu1 %99  ;;  %v120_v36 = vsub.f32 %v408_v55, %v106_v24 }
  0x92   :  { %v118_v26 = vsub.f32 %v85_v58, %v100_v25  ;;  %v94_v27 = vpop.xlane.xlu0 %93 }
  0x93   :  { %v116_v28 = vsub.f32 %v83_v0, %v94_v27  ;;  %v132_v45 = vmul.f32 1.442695, %v120_v36 }
  0x94   :  { %v128_v29 = vmul.f32 1.442695, %v118_v26 }
  0x95   :  { %v124_v30 = vmul.f32 1.442695, %v116_v28 }
  0x96   :  { %328 = vpow2.f32 %v128_v29 }
  0x97   :  { %330 = vpow2.f32 %v124_v30 }
  0x98   :  { %v109_v31 = vpop.xlane.xlu2 %108 }
  0x99   :  { %v121_v32 = vsub.f32 %v88_v8, %v109_v31  ;;  %v103_v33 = vpop.xlane.xlu1 %102 }
  0x9a   :  { %v119_v34 = vsub.f32 %v86_v9, %v103_v33  ;;  %v97_v35 = vpop.xlane.xlu0 %96 }
  0x9b   :  { %v134_v37 = vmul.f32 1.442695, %v121_v32  ;;  %v117_v38 = vsub.f32 %v84_v11, %v97_v35 }
  0x9c   :  { %v435_v39 = vpop.eup %328  ;;  %v130_v40 = vmul.f32 1.442695, %v119_v34 }
  0x9d   :  { %v437_v41 = vpop.eup %330  ;;  %332 = vpow2.f32 %v134_v37  ;;  %v126_v42 = vmul.f32 1.442695, %v117_v38  ;;  %v146_v43 = vsel %vm91_vm0, %v435_v39, 0.0 }
  0x9e   :  { %334 = vpow2.f32 %v130_v40  ;;  %147 = vadd.xlane.f32.xlu1 %v146_v43  ;;  %v140_v44 = vsel %vm91_vm0, %v437_v41, 0.0 }
  0x9f   :  { %336 = vpow2.f32 %v126_v42  ;;  %141 = vadd.xlane.f32.xlu2 %v140_v44 }
  0xa0   :  { %338 = vpow2.f32 %v132_v45 }
  0xa1   :  { %v115_v46 = vpop.xlane.xlu1 %114 }
  0xa2   :  { %v112_v47 = vpop.xlane.xlu0 %111  ;;  %v123_v50 = vsub.f32 %v90_v20, %v115_v46 }
  0xa3   :  { %v443_v48 = vpop.eup %332  ;;  %v122_v49 = vsub.f32 %v89_v21, %v112_v47 }
  0xa4   :  { %v445_v51 = vpop.eup %334  ;;  %v155_v52 = vsel %vm91_vm0, %v443_v48, 0.0  ;;  %v138_v57 = vmul.f32 1.442695, %v123_v50 }
  0xa5   :  { %v449_v53 = vpop.eup %336  ;;  %v136_v54 = vmul.f32 1.442695, %v122_v49  ;;  %v149_v55 = vsel %vm91_vm0, %v445_v51, 0.0 }
  0xa6   :  { %156 = vadd.xlane.f32.xlu1 %v155_v52  ;;  %v143_v56 = vsel %vm91_vm0, %v449_v53, 0.0  ;;  %v455_v58 = vpop.eup %338 }
  0xa7   :  { %340 = vpow2.f32 %v136_v54  ;;  %150 = vadd.xlane.f32.xlu2 %v149_v55  ;;  %144 = vadd.xlane.f32.xlu0 %v143_v56  ;;  %v152_v59 = vsel %vm91_vm0, %v455_v58, 0.0 }
  0xa8   :  { %342 = vpow2.f32 %v138_v57 }
  0xad   :  { %v459_v60 = vpop.eup %340 }
  0xae   :  { %v158_v61 = vsel %vm91_vm0, %v459_v60, 0.0  ;;  %v463_v62 = vpop.eup %342 }
  0xaf   :  { %153 = vadd.xlane.f32.xlu0 %v152_v59  ;;  %159 = vadd.xlane.f32.xlu2 %v158_v61  ;;  %v161_v63 = vsel %vm91_vm0, %v463_v62, 0.0 }
  0xb7   :  { %162 = vadd.xlane.f32.xlu0 %v161_v63 }
 0x111   :  { %v148_v0 = vpop.xlane.xlu1 %147 }
 0x112   :  { %344 = vrcp.f32 %v148_v0  ;;  %v142_v1 = vpop.xlane.xlu2 %141  ;;  %v203_v10 = vand.u32 2147483647, %v148_v0  ;;  %v205_v11 = vand.u32 2147483648, %v148_v0  ;;  %vm199_vm1 = vweird.f32 %v148_v0 }
 0x113   :  { %346 = vrcp.f32 %v142_v1  ;;  %v173_v13 = vand.u32 2147483647, %v142_v1  ;;  %v175_v14 = vand.u32 2147483648, %v142_v1  ;;  %vm169_vm5 = vweird.f32 %v142_v1 }
 0x114   :  { %vm473_vm4 = vcmp.eq.f32.partialorder %v203_v10, 8.507059e+37  ;;  %v206_v19 = vor.u32 1.1754944e-38, %v205_v11 }
 0x115   :  { %vm477_vm7 = vcmp.eq.f32.partialorder %v173_v13, 8.507059e+37  ;;  %v176_v23 = vor.u32 1.1754944e-38, %v175_v14 }
 0x118   :  { %v345_v2 = vpop.eup %344 }
 0x119   :  { %v347_v3 = vpop.eup %346  ;;  %v195_v4 = vmul.f32 %v345_v2, %v148_v0  ;;  %v157_v5 = vpop.xlane.xlu1 %156  ;;  %vm200_vm2 = vweird.f32 %v345_v2 }
 0x11a   :  { %v165_v6 = vmul.f32 %v347_v3, %v142_v1  ;;  %348 = vrcp.f32 %v157_v5  ;;  %v467_v7 = vpop.xlane.xlu2 %150  ;;  %v469_v8 = vpop.xlane.xlu0 %144  ;;  %vm170_vm3 = vweird.f32 %v347_v3  ;;  %vm201_vm6 = vmor %vm199_vm1, %vm200_vm2  ;;  %vm244_vm8 = vweird.f32 %v157_v5 }
 0x11b   :  { %v196_v9 = vsub.f32 1.0, %v195_v4  ;;  %350 = vrcp.f32 %v467_v7  ;;  %vm171_vm9 = vmor %vm169_vm5, %vm170_vm3  ;;  %v248_v27 = vand.u32 2147483647, %v157_v5  ;;  %v250_v28 = vand.u32 2147483648, %v157_v5 }
 0x11c   :  { %v166_v12 = vsub.f32 1.0, %v165_v6  ;;  %352 = vrcp.f32 %v469_v8  ;;  %vm214_vm10 = vweird.f32 %v467_v7  ;;  %v218_v42 = vand.u32 2147483647, %v467_v7 }
 0x11d   :  { %v197_v15 = vmul.f32 %v345_v2, %v196_v9  ;;  %v251_v45 = vor.u32 1.1754944e-38, %v250_v28  ;;  %vm249_vm14 = vcmp.eq.f32.partialorder %v248_v27, 8.507059e+37  ;;  %v190_v50 = vand.u32 2147483648, %v469_v8 }
 0x11e   :  { %v167_v16 = vmul.f32 %v347_v3, %v166_v12  ;;  %v188_v55 = vand.u32 2147483647, %v469_v8  ;;  %vm219_vm2 = vcmp.eq.f32.partialorder %v218_v42, 8.507059e+37  ;;  %vm184_vm3 = vweird.f32 %v469_v8 }
 0x11f   :  { %v198_v17 = vadd.f32 %v345_v2, %v197_v15  ;;  %v191_v4 = vor.u32 1.1754944e-38, %v190_v50 }
 0x120   :  { %v349_v20 = vpop.eup %348  ;;  %v168_v21 = vadd.f32 %v347_v3, %v167_v16  ;;  %vm189_vm5 = vcmp.eq.f32.partialorder %v188_v55, 8.507059e+37 }
 0x121   :  { %v351_v24 = vpop.eup %350  ;;  %v202_v25 = vsel %vm201_vm6, %v345_v2, %v198_v17  ;;  %v240_v26 = vmul.f32 %v349_v20, %v157_v5  ;;  %vm245_vm11 = vweird.f32 %v349_v20 }
 0x122   :  { %v207_v29 = vsel %vm473_vm4, %v206_v19, %v202_v25  ;;  %v172_v30 = vsel %vm171_vm9, %v347_v3, %v168_v21  ;;  %v210_v31 = vmul.f32 %v351_v24, %v467_v7  ;;  %v485_v32 = vpop.xlane.xlu2 %159  ;;  %v487_v33 = vpop.xlane.xlu0 %153  ;;  %vm506_vm12 = vmor %vm244_vm8, %vm245_vm11  ;;  %vm215_vm13 = vweird.f32 %v351_v24 }
 0x123   :  { %v353_v34 = vpop.eup %352  ;;  %v208_v35 = vmul.f32 %v435_v39, %v207_v29  ;;  %v177_v36 = vsel %vm477_vm7, %v176_v23, %v172_v30  ;;  %v241_v37 = vsub.f32 1.0, %v240_v26  ;;  %v220_v39 = vand.u32 2147483648, %v467_v7  ;;  %vm216_vm1 = vmor %vm214_vm10, %vm215_vm13 }
 0x124   :  { %v178_v38 = vmul.f32 %v437_v41, %v177_v36  ;;  %v211_v40 = vsub.f32 1.0, %v210_v31  ;;  %v180_v43 = vmul.f32 %v353_v34, %v469_v8  ;;  %354 = vrcp.f32 %v485_v32 }
 0x125   :  { %286 = vst.msk [vmem:[%s558_s2 + $0x10] sm:$0xff] %vm91_vm0, %v208_v35  ;;  %v242_v44 = vmul.f32 %v349_v20, %v241_v37  ;;  %356 = vrcp.f32 %v487_v33  ;;  %vm185_vm15 = vweird.f32 %v353_v34  ;;  %v221_v57 = vor.u32 1.1754944e-38, %v220_v39 }
 0x126   :  { %284 = vst.msk [vmem:[%s558_s2] sm:$0xff] %vm91_vm0, %v178_v38  ;;  %v212_v46 = vmul.f32 %v351_v24, %v211_v40  ;;  %v181_v47 = vsub.f32 1.0, %v180_v43  ;;  %vm186_vm4 = vmor %vm184_vm3, %vm185_vm15  ;;  %vm259_vm6 = vweird.f32 %v485_v32  ;;  %v263_v11 = vand.u32 2147483647, %v485_v32 }
 0x127   :  { %v243_v49 = vadd.f32 %v349_v20, %v242_v44  ;;  %v265_v12 = vand.u32 2147483648, %v485_v32  ;;  %v233_v15 = vand.u32 2147483647, %v487_v33  ;;  %v235_v16 = vand.u32 2147483648, %v487_v33 }
 0x128   :  { %v213_v52 = vadd.f32 %v351_v24, %v212_v46  ;;  %v182_v54 = vmul.f32 %v353_v34, %v181_v47  ;;  %vm264_vm10 = vcmp.eq.f32.partialorder %v263_v11, 8.507059e+37  ;;  %vm229_vm11 = vweird.f32 %v487_v33 }
 0x129   :  { %v247_v56 = vsel %vm506_vm12, %v349_v20, %v243_v49  ;;  %v266_v20 = vor.u32 1.1754944e-38, %v265_v12  ;;  %vm234_vm13 = vcmp.eq.f32.partialorder %v233_v15, 8.507059e+37  ;;  %v236_v23 = vor.u32 1.1754944e-38, %v235_v16 }
 0x12a   :  { %v252_v59 = vsel %vm249_vm14, %v251_v45, %v247_v56  ;;  %v217_v61 = vsel %vm216_vm1, %v351_v24, %v213_v52  ;;  %v183_v63 = vadd.f32 %v353_v34, %v182_v54  ;;  %v163_v0 = vpop.xlane.xlu0 %162  ;;  %v355_v1 = vpop.eup %354 }
 0x12b   :  { %v253_v2 = vmul.f32 %v443_v48, %v252_v59  ;;  %v222_v3 = vsel %vm219_vm2, %v221_v57, %v217_v61  ;;  %358 = vrcp.f32 %v163_v0  ;;  %v357_v5 = vpop.eup %356  ;;  %v255_v9 = vmul.f32 %v355_v1, %v485_v32 }
 0x12c   :  { %v223_v6 = vmul.f32 %v445_v51, %v222_v3  ;;  %v187_v7 = vsel %vm186_vm4, %v353_v34, %v183_v63  ;;  %v225_v10 = vmul.f32 %v357_v5, %v487_v33  ;;  %vm260_vm7 = vweird.f32 %v355_v1 }
 0x12d   :  { %289 = vst.msk [vmem:[%s558_s2 + $0x28] sm:$0xff] %vm91_vm0, %v253_v2  ;;  %v192_v8 = vsel %vm189_vm5, %v191_v4, %v187_v7  ;;  %v256_v51 = vsub.f32 1.0, %v255_v9  ;;  %vm230_vm8 = vweird.f32 %v357_v5  ;;  %vm261_vm9 = vmor %vm259_vm6, %vm260_vm7  ;;  %v278_v27 = vand.u32 2147483647, %v163_v0 }
 0x12e   :  { %287 = vst.msk [vmem:[%s558_s2 + $0x18] sm:$0xff] %vm91_vm0, %v223_v6  ;;  %v193_v48 = vmul.f32 %v449_v53, %v192_v8  ;;  %v226_v13 = vsub.f32 1.0, %v225_v10  ;;  %vm231_vm12 = vmor %vm229_vm11, %vm230_vm8  ;;  %v280_v28 = vand.u32 2147483648, %v163_v0  ;;  %vm274_vm15 = vweird.f32 %v163_v0 }
 0x12f   :  { %v257_v14 = vmul.f32 %v355_v1, %v256_v51  ;;  %vm279_vm2 = vcmp.eq.f32.partialorder %v278_v27, 8.507059e+37 }
 0x130   :  { %285 = vst.msk [vmem:[%s558_s2 + $0x8] sm:$0xff] %vm91_vm0, %v193_v48  ;;  %v227_v17 = vmul.f32 %v357_v5, %v226_v13  ;;  %v281_v34 = vor.u32 1.1754944e-38, %v280_v28 }
 0x131   :  { %v359_v53 = vpop.eup %358  ;;  %v258_v18 = vadd.f32 %v355_v1, %v257_v14 }
 0x132   :  { %v270_v19 = vmul.f32 %v359_v53, %v163_v0  ;;  %v228_v21 = vadd.f32 %v357_v5, %v227_v17  ;;  %vm275_vm14 = vweird.f32 %v359_v53 }
 0x133   :  { %v262_v22 = vsel %vm261_vm9, %v355_v1, %v258_v18  ;;  %vm276_vm1 = vmor %vm274_vm15, %vm275_vm14 }
 0x134   :  { %v271_v24 = vsub.f32 1.0, %v270_v19  ;;  %v267_v25 = vsel %vm264_vm10, %v266_v20, %v262_v22  ;;  %v232_v26 = vsel %vm231_vm12, %v357_v5, %v228_v21 }
 0x135   :  { %v268_v29 = vmul.f32 %v459_v60, %v267_v25  ;;  %v237_v30 = vsel %vm234_vm13, %v236_v23, %v232_v26 }
 0x136   :  { %v272_v31 = vmul.f32 %v359_v53, %v271_v24  ;;  %v238_v32 = vmul.f32 %v455_v58, %v237_v30 }
 0x137   :  { %290 = vst.msk [vmem:[%s558_s2 + $0x30] sm:$0xff] %vm91_vm0, %v268_v29 }
 0x138   :  { %v273_v33 = vadd.f32 %v359_v53, %v272_v31  ;;  %288 = vst.msk [vmem:[%s558_s2 + $0x20] sm:$0xff] %vm91_vm0, %v238_v32 }
 0x13a   :  { %v277_v60 = vsel %vm276_vm1, %v359_v53, %v273_v33 }
 0x13b   :  { %v282_v35 = vsel %vm279_vm2, %v281_v34, %v277_v60 }
 0x13c   :  { %v283_v36 = vmul.f32 %v463_v62, %v282_v35 }
 0x13e   :  { %291 = vst.msk [vmem:[%s558_s2 + $0x38] sm:$0xff] %vm91_vm0, %v283_v36 }

</bundles_post_ra>
